<compile_context>
chip_gen: v7x
topology: tpu7x:2x2x1
jax: 0.10.0
libtpu: 0.0.40
codegen_flags: <defaults>
</compile_context>

<pallas_src>
import functools

import jax
import jax.numpy as jnp
import numpy as np
from jax import lax
from jax.experimental import pallas as pl
from jax.experimental.pallas import tpu as pltpu

NIN = 4                     # module input channels
NOUT = 16                   # module output channels
CCONV = NOUT - NIN          # conv-branch channels (ninput < noutput path)
K = 9 * NIN                 # im2col depth (3x3 taps x NIN channels)
EPS = 1e-5                  # nn.BatchNorm2d default eps

_COMPILER_PARAMS = pltpu.CompilerParams(
    dimension_semantics=("parallel",),
    vmem_limit_bytes=48 * 1024 * 1024,   # <= v7x physical 64 MiB, fine on v5e/v6e
)

# Column order of w_mat: (kh, kw) groups of NIN channels each, matching the
# order in which _conv_pool assembles the tap rows from planes A / planes B.
_TAP_ORDER = ((0, 0), (0, 1), (1, 0), (1, 1),      # A @ lane offset 0
              (2, 0), (2, 1),                      # A[ee,eo] @ lane offset +OW
              (0, 2), (1, 2),                      # B @ lane offset 0
              (2, 2))                              # B[ee]   @ lane offset +OW


def _conv_pool(a, b, w, ow, m):
    """Conv (MXU) + 2x2 max pool from the flattened parity planes.

    a: [16, LA] bf16  -- planes [ee, eo, oe, oo] x NIN, flattened (OH+1, OW)
    b: [ 8, LA] bf16  -- column-shifted planes [ee, oe] x NIN, same layout
    w: [12, 36] bf16  -- conv weight, columns ordered per _TAP_ORDER
    Row shift (+1 output row) is a +OW lane offset; column shift is baked into b.
    """
    a0 = a[:, :m]                         # taps (0,0) (0,1) (1,0) (1,1)
    a1 = a[:2 * NIN, ow:ow + m]           # taps (2,0) (2,1)         (ee, eo)
    b0 = b[:, :m]                         # taps (0,2) (1,2)         (ee, oe)
    b1 = b[:NIN, ow:ow + m]               # tap  (2,2)               (ee)

    conv = (jnp.dot(w[:, 0:16], a0, preferred_element_type=jnp.float32)
            + jnp.dot(w[:, 16:24], a1, preferred_element_type=jnp.float32)
            + jnp.dot(w[:, 24:32], b0, preferred_element_type=jnp.float32)
            + jnp.dot(w[:, 32:36], b1, preferred_element_type=jnp.float32))

    # 2x2/stride-2 max pool taps are exactly the (kh,kw) in {1,2}x{1,2} taps:
    #   oo@(0,0), oe@(0,+1), eo@(+1,0), ee@(+1,+1)
    pool = jnp.maximum(jnp.maximum(a0[3 * NIN:4 * NIN], b0[NIN:2 * NIN]),
                       jnp.maximum(a1[NIN:2 * NIN], b1[:NIN])).astype(jnp.float32)
    return conv, pool                     # [CCONV, m] f32, [NIN, m] f32


def _stats_kernel(a_ref, b_ref, w_ref, stat_ref, *, ow, m):
    # Pass 1: per-image per-channel sum and sum-of-squares of the pre-BN output.
    a = a_ref[...][0]                                           # [16, LA] bf16
    b = b_ref[...][0]                                           # [ 8, LA] bf16
    conv, pool = _conv_pool(a, b, w_ref[...], ow, m)
    s_conv = jnp.sum(conv, axis=1, keepdims=True)               # [CCONV, 1]
    s_pool = jnp.sum(pool, axis=1, keepdims=True)               # [NIN, 1]
    q_conv = jnp.sum(conv * conv, axis=1, keepdims=True)
    q_pool = jnp.sum(pool * pool, axis=1, keepdims=True)
    stat = jnp.concatenate([s_conv, s_pool, q_conv, q_pool], axis=0)   # [32, 1]
    # Single full-block store.
    stat_ref[0, :, :] = jnp.broadcast_to(stat, (2 * NOUT, 128))


def _apply_kernel(a_ref, b_ref, w_ref, scale_ref, shift_ref, out_ref, *, ow, m):
    # Pass 2: recompute conv+pool and apply folded BN (scale/shift) + ReLU.
    a = a_ref[...][0]
    b = b_ref[...][0]
    conv, pool = _conv_pool(a, b, w_ref[...], ow, m)
    scale = scale_ref[...]                                      # [NOUT, 1] f32
    shift = shift_ref[...]                                      # [NOUT, 1] f32
    # torch.cat([conv, pool], dim=1): conv channels first, then pool channels.
    y_conv = jnp.maximum(conv * scale[:CCONV] + shift[:CCONV], 0.0)
    y_pool = jnp.maximum(pool * scale[CCONV:] + shift[CCONV:], 0.0)
    # Single full-block, lane-dense store of the NCHW-flattened image slab.
    out_ref[0, :, :] = jnp.concatenate([y_conv, y_pool], axis=0).astype(out_ref.dtype)


@jax.jit
def downsampler_block(x, weight, bias, gamma, beta):
    """x: [N, NIN, H, W] f32 (NCHW). Returns [N, NOUT, H//2, W//2] f32.

    `bias` is accepted for interface parity but is mathematically a no-op under
    training-mode BatchNorm (a per-channel constant cancels), so it is unused.
    """
    del bias
    N, cin, H, W = x.shape
    assert cin == NIN and H % 2 == 0 and W % 2 == 0
    OH, OW = H // 2, W // 2
    M = OH * OW                 # valid output positions per image
    LA = (OH + 1) * OW          # per-image flattened plane length (+1-row halo)

    # ---- glue: space-to-depth parity planes of the pad-1 input, expressed as
    # strided slices of x + small pads (fusion-friendly, ~one HBM pass).
    # Plane value P[a, b] below is x_pad[2a + dr, 2b + dc] with dr/dc the
    # row/col parity; A keeps columns [0, OW), B is the +1-column shift.
    s00 = x[:, :, 0::2, 0::2]   # x[2i,   2j  ]
    s01 = x[:, :, 0::2, 1::2]   # x[2i,   2j+1]
    s10 = x[:, :, 1::2, 0::2]   # x[2i+1, 2j  ]
    s11 = x[:, :, 1::2, 1::2]   # x[2i+1, 2j+1]

    def pad4(t, rows, cols):
        return jnp.pad(t, ((0, 0), (0, 0), rows, cols))

    a_ee = pad4(s11[:, :, :, :OW - 1], (1, 0), (1, 0))   # x[2a-1, 2b-1]
    a_eo = pad4(s10, (1, 0), (0, 0))                     # x[2a-1, 2b  ]
    a_oe = pad4(s01[:, :, :, :OW - 1], (0, 1), (1, 0))   # x[2a,   2b-1]
    a_oo = pad4(s00, (0, 1), (0, 0))                     # x[2a,   2b  ]
    b_ee = pad4(s11, (1, 0), (0, 0))                     # x[2a-1, 2b+1]
    b_oe = pad4(s01, (0, 1), (0, 0))                     # x[2a,   2b+1]

    planes_a = (jnp.concatenate([a_ee, a_eo, a_oe, a_oo], axis=1)
                .reshape(N, 4 * NIN, LA).astype(jnp.bfloat16))     # [N, 16, LA]
    planes_b = (jnp.concatenate([b_ee, b_oe], axis=1)
                .reshape(N, 2 * NIN, LA).astype(jnp.bfloat16))     # [N,  8, LA]

    # weight [CCONV, NIN, 3, 3] -> [CCONV, 36] with columns in _TAP_ORDER.
    w_mat = jnp.concatenate([weight[:, :, kh, kw] for kh, kw in _TAP_ORDER],
                            axis=1).astype(jnp.bfloat16)           # [12, 36]

    a_spec = pl.BlockSpec((1, 4 * NIN, LA), lambda n: (n, 0, 0))
    b_spec = pl.BlockSpec((1, 2 * NIN, LA), lambda n: (n, 0, 0))
    w_spec = pl.BlockSpec((CCONV, K), lambda n: (0, 0))

    # ---- pass 1: per-image partial BN statistics (parallel over images) ----
    stats = pl.pallas_call(
        functools.partial(_stats_kernel, ow=OW, m=M),
        grid=(N,),
        in_specs=[a_spec, b_spec, w_spec],
        out_specs=pl.BlockSpec((1, 2 * NOUT, 128), lambda n: (n, 0, 0)),
        out_shape=jax.ShapeDtypeStruct((N, 2 * NOUT, 128), jnp.float32),
        compiler_params=_COMPILER_PARAMS,
    )(planes_a, planes_b, w_mat)

    # Tiny global reduction + BN parameter folding (16 channels) in XLA.
    total = N * M
    sums = jnp.sum(stats[:, :NOUT, 0], axis=0)                    # [NOUT]
    ssqs = jnp.sum(stats[:, NOUT:, 0], axis=0)                    # [NOUT]
    mean = sums / total
    var = ssqs / total - mean * mean                              # biased (training BN)
    inv = lax.rsqrt(var + EPS)
    scale = (gamma * inv).astype(jnp.float32).reshape(NOUT, 1)
    shift = (beta - mean * gamma * inv).astype(jnp.float32).reshape(NOUT, 1)

    # ---- pass 2: conv + pool + folded BN + ReLU, direct NCHW-flattened out --
    out = pl.pallas_call(
        functools.partial(_apply_kernel, ow=OW, m=M),
        grid=(N,),
        in_specs=[a_spec, b_spec, w_spec,
                  pl.BlockSpec((NOUT, 1), lambda n: (0, 0)),
                  pl.BlockSpec((NOUT, 1), lambda n: (0, 0))],
        out_specs=pl.BlockSpec((1, NOUT, M), lambda n: (n, 0, 0)),
        out_shape=jax.ShapeDtypeStruct((N, NOUT, M), jnp.float32),
        compiler_params=_COMPILER_PARAMS,
    )(planes_a, planes_b, w_mat, scale, shift)

    # Trailing-dim reshape only (free) -> NCHW; no transpose pass.
    return out.reshape(N, NOUT, OH, OW)


def _reference(x, weight, bias, gamma, beta):
    conv = lax.conv_general_dilated(
        x, weight, window_strides=(2, 2), padding=((1, 1), (1, 1)),
        dimension_numbers=("NCHW", "OIHW", "NCHW")) + bias.reshape(1, -1, 1, 1)
    pooled = lax.reduce_window(
        x, -jnp.inf, lax.max, (1, 1, 2, 2), (1, 1, 2, 2), "VALID")
    y = jnp.concatenate([conv, pooled], axis=1)
    mean = jnp.mean(y, axis=(0, 2, 3), keepdims=True)
    var = jnp.mean(jnp.square(y - mean), axis=(0, 2, 3), keepdims=True)
    yhat = (y - mean) * lax.rsqrt(var + EPS)
    return jnp.maximum(yhat * gamma.reshape(1, -1, 1, 1) + beta.reshape(1, -1, 1, 1), 0.0)


if __name__ == "__main__":
    key = jax.random.PRNGKey(0)
    kx, kw, kb, kg, kbt = jax.random.split(key, 5)
    x = jax.random.normal(kx, (2, NIN, 16, 16), dtype=jnp.float32)

    # deterministic synthetic parameter init (no checkpoint load)
    fan_in = NIN * 9
    weight = jax.random.normal(kw, (CCONV, NIN, 3, 3), dtype=jnp.float32) / np.sqrt(fan_in)
    bias = jax.random.normal(kb, (CCONV,), dtype=jnp.float32) * 0.1
    gamma = 1.0 + 0.1 * jax.random.normal(kg, (NOUT,), dtype=jnp.float32)
    beta = 0.1 * jax.random.normal(kbt, (NOUT,), dtype=jnp.float32)

    out = downsampler_block(x, weight, bias, gamma, beta)
    out = jax.block_until_ready(out)

    ref = _reference(x, weight, bias, gamma, beta)
    # bf16 bulk data + f32 accumulation -> slightly looser tolerance than pure f32.
    np.testing.assert_allclose(np.asarray(out), np.asarray(ref), rtol=2e-2, atol=2e-2)
    print("KERNEL_OK")
</pallas_src>

<mosaic_0001>
module attributes {stable_mosaic.version = 11 : i64} {
  func.func @_stats_kernel(%arg0: i32, %arg1: memref<1x16x72xbf16, #tpu.memory_space<vmem>>, %arg2: memref<1x8x72xbf16, #tpu.memory_space<vmem>>, %arg3: memref<12x36xbf16, #tpu.memory_space<vmem>>, %arg4: memref<1x32x128xf32, #tpu.memory_space<vmem>>) attributes {dimension_semantics = [#tpu.dimension_semantics<parallel>], iteration_bounds = array<i64: 2>, scalar_prefetch = 0 : i64, scratch_operands = 0 : i64, tpu.core_type = #tpu.core_type<tc>, window_params = [{transform_indices = @transform_0, window_bounds = array<i64: 1, 16, 72>}, {transform_indices = @transform_1, window_bounds = array<i64: 1, 8, 72>}, {pipeline_mode = #tpu.pipeline_mode<synchronous>, transform_indices = @transform_2, window_bounds = array<i64: 12, 36>}, {transform_indices = @transform_3, window_bounds = array<i64: 1, 32, 128>}]} {
    %c0 = arith.constant 0 : index
    %c0_0 = arith.constant 0 : index
    %c0_1 = arith.constant 0 : index
    %0 = vector.load %arg1[%c0, %c0_0, %c0_1] : memref<1x16x72xbf16, #tpu.memory_space<vmem>>, vector<1x16x72xbf16>
    %1 = vector.shape_cast %0 : vector<1x16x72xbf16> to vector<16x72xbf16>
    %c0_2 = arith.constant 0 : index
    %c0_3 = arith.constant 0 : index
    %c0_4 = arith.constant 0 : index
    %2 = vector.load %arg2[%c0_2, %c0_3, %c0_4] : memref<1x8x72xbf16, #tpu.memory_space<vmem>>, vector<1x8x72xbf16>
    %3 = vector.shape_cast %2 : vector<1x8x72xbf16> to vector<8x72xbf16>
    %c0_5 = arith.constant 0 : index
    %c0_6 = arith.constant 0 : index
    %4 = vector.load %arg3[%c0_5, %c0_6] : memref<12x36xbf16, #tpu.memory_space<vmem>>, vector<12x36xbf16>
    %5 = vector.extract_strided_slice %1 {offsets = [0, 0], sizes = [16, 64], strides = [1, 1]} : vector<16x72xbf16> to vector<16x64xbf16>
    %6 = vector.extract_strided_slice %1 {offsets = [0, 8], sizes = [8, 64], strides = [1, 1]} : vector<16x72xbf16> to vector<8x64xbf16>
    %7 = vector.extract_strided_slice %3 {offsets = [0, 0], sizes = [8, 64], strides = [1, 1]} : vector<8x72xbf16> to vector<8x64xbf16>
    %8 = vector.extract_strided_slice %3 {offsets = [0, 8], sizes = [4, 64], strides = [1, 1]} : vector<8x72xbf16> to vector<4x64xbf16>
    %9 = vector.extract_strided_slice %4 {offsets = [0, 0], sizes = [12, 16], strides = [1, 1]} : vector<12x36xbf16> to vector<12x16xbf16>
    %cst = arith.constant dense<0.000000e+00> : vector<12x64xf32>
    %10 = tpu.matmul %9, %5, %cst {dimension_numbers = #tpu.dot_dimension_numbers<[1], [0], [0], [1], [0, 0, 1, 1], [], []>} : vector<12x16xbf16>, vector<16x64xbf16>, vector<12x64xf32> -> vector<12x64xf32>
    %11 = vector.extract_strided_slice %4 {offsets = [0, 16], sizes = [12, 8], strides = [1, 1]} : vector<12x36xbf16> to vector<12x8xbf16>
    %cst_7 = arith.constant dense<0.000000e+00> : vector<12x64xf32>
    %12 = tpu.matmul %11, %6, %cst_7 {dimension_numbers = #tpu.dot_dimension_numbers<[1], [0], [0], [1], [0, 0, 1, 1], [], []>} : vector<12x8xbf16>, vector<8x64xbf16>, vector<12x64xf32> -> vector<12x64xf32>
    %13 = arith.addf %10, %12 : vector<12x64xf32>
    %14 = vector.extract_strided_slice %4 {offsets = [0, 24], sizes = [12, 8], strides = [1, 1]} : vector<12x36xbf16> to vector<12x8xbf16>
    %cst_8 = arith.constant dense<0.000000e+00> : vector<12x64xf32>
    %15 = tpu.matmul %14, %7, %cst_8 {dimension_numbers = #tpu.dot_dimension_numbers<[1], [0], [0], [1], [0, 0, 1, 1], [], []>} : vector<12x8xbf16>, vector<8x64xbf16>, vector<12x64xf32> -> vector<12x64xf32>
    %16 = arith.addf %13, %15 : vector<12x64xf32>
    %17 = vector.extract_strided_slice %4 {offsets = [0, 32], sizes = [12, 4], strides = [1, 1]} : vector<12x36xbf16> to vector<12x4xbf16>
    %cst_9 = arith.constant dense<0.000000e+00> : vector<12x64xf32>
    %18 = tpu.matmul %17, %8, %cst_9 {dimension_numbers = #tpu.dot_dimension_numbers<[1], [0], [0], [1], [0, 0, 1, 1], [], []>} : vector<12x4xbf16>, vector<4x64xbf16>, vector<12x64xf32> -> vector<12x64xf32>
    %19 = arith.addf %16, %18 : vector<12x64xf32>
    %20 = vector.extract_strided_slice %5 {offsets = [12, 0], sizes = [4, 64], strides = [1, 1]} : vector<16x64xbf16> to vector<4x64xbf16>
    %21 = vector.extract_strided_slice %7 {offsets = [4, 0], sizes = [4, 64], strides = [1, 1]} : vector<8x64xbf16> to vector<4x64xbf16>
    %22 = arith.maximumf %20, %21 : vector<4x64xbf16>
    %23 = vector.extract_strided_slice %6 {offsets = [4, 0], sizes = [4, 64], strides = [1, 1]} : vector<8x64xbf16> to vector<4x64xbf16>
    %24 = arith.maximumf %23, %8 : vector<4x64xbf16>
    %25 = arith.maximumf %22, %24 : vector<4x64xbf16>
    %26 = arith.extf %25 : vector<4x64xbf16> to vector<4x64xf32>
    %cst_10 = arith.constant dense<0.000000e+00> : vector<12xf32>
    %27 = vector.multi_reduction <add>, %19, %cst_10 [1] : vector<12x64xf32> to vector<12xf32>
    %28 = vector.shape_cast %27 : vector<12xf32> to vector<12x1xf32>
    %cst_11 = arith.constant dense<0.000000e+00> : vector<4xf32>
    %29 = vector.multi_reduction <add>, %26, %cst_11 [1] : vector<4x64xf32> to vector<4xf32>
    %30 = vector.shape_cast %29 : vector<4xf32> to vector<4x1xf32>
    %31 = arith.mulf %19, %19 : vector<12x64xf32>
    %cst_12 = arith.constant dense<0.000000e+00> : vector<12xf32>
    %32 = vector.multi_reduction <add>, %31, %cst_12 [1] : vector<12x64xf32> to vector<12xf32>
    %33 = vector.shape_cast %32 : vector<12xf32> to vector<12x1xf32>
    %34 = arith.mulf %26, %26 : vector<4x64xf32>
    %cst_13 = arith.constant dense<0.000000e+00> : vector<4xf32>
    %35 = vector.multi_reduction <add>, %34, %cst_13 [1] : vector<4x64xf32> to vector<4xf32>
    %36 = vector.shape_cast %35 : vector<4xf32> to vector<4x1xf32>
    %37 = tpu.concatenate %28, %30, %33, %36 in 0 : vector<12x1xf32>, vector<4x1xf32>, vector<12x1xf32>, vector<4x1xf32> -> vector<32x1xf32>
    %38 = vector.shape_cast %37 : vector<32x1xf32> to vector<32x1xf32>
    %39 = vector.broadcast %38 : vector<32x1xf32> to vector<32x128xf32>
    %c0_14 = arith.constant 0 : index
    %c0_15 = arith.constant 0 : index
    %c0_16 = arith.constant 0 : index
    %40 = vector.load %arg4[%c0_14, %c0_15, %c0_16] : memref<1x32x128xf32, #tpu.memory_space<vmem>>, vector<1x32x128xf32>
    %41 = vector.shape_cast %40 : vector<1x32x128xf32> to vector<32x128xf32>
    %42 = vector.shape_cast %39 : vector<32x128xf32> to vector<1x32x128xf32>
    tpu.vector_store %arg4[%c0_14, %c0_15, %c0_16], %42 {strides = array<i32>} : memref<1x32x128xf32, #tpu.memory_space<vmem>>, vector<1x32x128xf32>,
    return
  }
  func.func @transform_0(%arg0: i32) -> (i32, i32, i32) {
    %c0_i32 = arith.constant 0 : i32
    %c0_i32_0 = arith.constant 0 : i32
    %c0_i32_1 = arith.constant 0 : i32
    return %arg0, %c0_i32, %c0_i32_0 : i32, i32, i32
  }
  func.func @transform_1(%arg0: i32) -> (i32, i32, i32) {
    %c0_i32 = arith.constant 0 : i32
    %c0_i32_0 = arith.constant 0 : i32
    %c0_i32_1 = arith.constant 0 : i32
    return %arg0, %c0_i32, %c0_i32_0 : i32, i32, i32
  }
  func.func @transform_2(%arg0: i32) -> (i32, i32) {
    %c0_i32 = arith.constant 0 : i32
    %c0_i32_0 = arith.constant 0 : i32
    %c0_i32_1 = arith.constant 0 : i32
    return %c0_i32, %c0_i32_0 : i32, i32
  }
  func.func @transform_3(%arg0: i32) -> (i32, i32, i32) {
    %c0_i32 = arith.constant 0 : i32
    %c0_i32_0 = arith.constant 0 : i32
    %c0_i32_1 = arith.constant 0 : i32
    return %arg0, %c0_i32, %c0_i32_0 : i32, i32, i32
  }
}

module attributes {stable_mosaic.version = 11 : i64} {
  func.func @_apply_kernel(%arg0: i32, %arg1: memref<1x16x72xbf16, #tpu.memory_space<vmem>>, %arg2: memref<1x8x72xbf16, #tpu.memory_space<vmem>>, %arg3: memref<12x36xbf16, #tpu.memory_space<vmem>>, %arg4: memref<16x1xf32, #tpu.memory_space<vmem>>, %arg5: memref<16x1xf32, #tpu.memory_space<vmem>>, %arg6: memref<1x16x64xf32, #tpu.memory_space<vmem>>) attributes {dimension_semantics = [#tpu.dimension_semantics<parallel>], iteration_bounds = array<i64: 2>, scalar_prefetch = 0 : i64, scratch_operands = 0 : i64, tpu.core_type = #tpu.core_type<tc>, window_params = [{transform_indices = @transform_0, window_bounds = array<i64: 1, 16, 72>}, {transform_indices = @transform_1, window_bounds = array<i64: 1, 8, 72>}, {pipeline_mode = #tpu.pipeline_mode<synchronous>, transform_indices = @transform_2, window_bounds = array<i64: 12, 36>}, {pipeline_mode = #tpu.pipeline_mode<synchronous>, transform_indices = @transform_3, window_bounds = array<i64: 16, 1>}, {pipeline_mode = #tpu.pipeline_mode<synchronous>, transform_indices = @transform_4, window_bounds = array<i64: 16, 1>}, {transform_indices = @transform_5, window_bounds = array<i64: 1, 16, 64>}]} {
    %c0 = arith.constant 0 : index
    %c0_0 = arith.constant 0 : index
    %c0_1 = arith.constant 0 : index
    %0 = vector.load %arg1[%c0, %c0_0, %c0_1] : memref<1x16x72xbf16, #tpu.memory_space<vmem>>, vector<1x16x72xbf16>
    %1 = vector.shape_cast %0 : vector<1x16x72xbf16> to vector<16x72xbf16>
    %c0_2 = arith.constant 0 : index
    %c0_3 = arith.constant 0 : index
    %c0_4 = arith.constant 0 : index
    %2 = vector.load %arg2[%c0_2, %c0_3, %c0_4] : memref<1x8x72xbf16, #tpu.memory_space<vmem>>, vector<1x8x72xbf16>
    %3 = vector.shape_cast %2 : vector<1x8x72xbf16> to vector<8x72xbf16>
    %c0_5 = arith.constant 0 : index
    %c0_6 = arith.constant 0 : index
    %4 = vector.load %arg3[%c0_5, %c0_6] : memref<12x36xbf16, #tpu.memory_space<vmem>>, vector<12x36xbf16>
    %5 = vector.extract_strided_slice %1 {offsets = [0, 0], sizes = [16, 64], strides = [1, 1]} : vector<16x72xbf16> to vector<16x64xbf16>
    %6 = vector.extract_strided_slice %1 {offsets = [0, 8], sizes = [8, 64], strides = [1, 1]} : vector<16x72xbf16> to vector<8x64xbf16>
    %7 = vector.extract_strided_slice %3 {offsets = [0, 0], sizes = [8, 64], strides = [1, 1]} : vector<8x72xbf16> to vector<8x64xbf16>
    %8 = vector.extract_strided_slice %3 {offsets = [0, 8], sizes = [4, 64], strides = [1, 1]} : vector<8x72xbf16> to vector<4x64xbf16>
    %9 = vector.extract_strided_slice %4 {offsets = [0, 0], sizes = [12, 16], strides = [1, 1]} : vector<12x36xbf16> to vector<12x16xbf16>
    %cst = arith.constant dense<0.000000e+00> : vector<12x64xf32>
    %10 = tpu.matmul %9, %5, %cst {dimension_numbers = #tpu.dot_dimension_numbers<[1], [0], [0], [1], [0, 0, 1, 1], [], []>} : vector<12x16xbf16>, vector<16x64xbf16>, vector<12x64xf32> -> vector<12x64xf32>
    %11 = vector.extract_strided_slice %4 {offsets = [0, 16], sizes = [12, 8], strides = [1, 1]} : vector<12x36xbf16> to vector<12x8xbf16>
    %cst_7 = arith.constant dense<0.000000e+00> : vector<12x64xf32>
    %12 = tpu.matmul %11, %6, %cst_7 {dimension_numbers = #tpu.dot_dimension_numbers<[1], [0], [0], [1], [0, 0, 1, 1], [], []>} : vector<12x8xbf16>, vector<8x64xbf16>, vector<12x64xf32> -> vector<12x64xf32>
    %13 = arith.addf %10, %12 : vector<12x64xf32>
    %14 = vector.extract_strided_slice %4 {offsets = [0, 24], sizes = [12, 8], strides = [1, 1]} : vector<12x36xbf16> to vector<12x8xbf16>
    %cst_8 = arith.constant dense<0.000000e+00> : vector<12x64xf32>
    %15 = tpu.matmul %14, %7, %cst_8 {dimension_numbers = #tpu.dot_dimension_numbers<[1], [0], [0], [1], [0, 0, 1, 1], [], []>} : vector<12x8xbf16>, vector<8x64xbf16>, vector<12x64xf32> -> vector<12x64xf32>
    %16 = arith.addf %13, %15 : vector<12x64xf32>
    %17 = vector.extract_strided_slice %4 {offsets = [0, 32], sizes = [12, 4], strides = [1, 1]} : vector<12x36xbf16> to vector<12x4xbf16>
    %cst_9 = arith.constant dense<0.000000e+00> : vector<12x64xf32>
    %18 = tpu.matmul %17, %8, %cst_9 {dimension_numbers = #tpu.dot_dimension_numbers<[1], [0], [0], [1], [0, 0, 1, 1], [], []>} : vector<12x4xbf16>, vector<4x64xbf16>, vector<12x64xf32> -> vector<12x64xf32>
    %19 = arith.addf %16, %18 : vector<12x64xf32>
    %20 = vector.extract_strided_slice %5 {offsets = [12, 0], sizes = [4, 64], strides = [1, 1]} : vector<16x64xbf16> to vector<4x64xbf16>
    %21 = vector.extract_strided_slice %7 {offsets = [4, 0], sizes = [4, 64], strides = [1, 1]} : vector<8x64xbf16> to vector<4x64xbf16>
    %22 = arith.maximumf %20, %21 : vector<4x64xbf16>
    %23 = vector.extract_strided_slice %6 {offsets = [4, 0], sizes = [4, 64], strides = [1, 1]} : vector<8x64xbf16> to vector<4x64xbf16>
    %24 = arith.maximumf %23, %8 : vector<4x64xbf16>
    %25 = arith.maximumf %22, %24 : vector<4x64xbf16>
    %26 = arith.extf %25 : vector<4x64xbf16> to vector<4x64xf32>
    %c0_10 = arith.constant 0 : index
    %c0_11 = arith.constant 0 : index
    %27 = vector.load %arg4[%c0_10, %c0_11] : memref<16x1xf32, #tpu.memory_space<vmem>>, vector<16x1xf32>
    %c0_12 = arith.constant 0 : index
    %c0_13 = arith.constant 0 : index
    %28 = vector.load %arg5[%c0_12, %c0_13] : memref<16x1xf32, #tpu.memory_space<vmem>>, vector<16x1xf32>
    %29 = vector.extract_strided_slice %27 {offsets = [0, 0], sizes = [12, 1], strides = [1, 1]} : vector<16x1xf32> to vector<12x1xf32>
    %30 = vector.broadcast %29 : vector<12x1xf32> to vector<12x64xf32>
    %31 = arith.mulf %19, %30 : vector<12x64xf32>
    %32 = vector.extract_strided_slice %28 {offsets = [0, 0], sizes = [12, 1], strides = [1, 1]} : vector<16x1xf32> to vector<12x1xf32>
    %33 = vector.broadcast %32 : vector<12x1xf32> to vector<12x64xf32>
    %34 = arith.addf %31, %33 : vector<12x64xf32>
    %cst_14 = arith.constant 0.000000e+00 : f32
    %35 = vector.broadcast %cst_14 : f32 to vector<12x64xf32>
    %36 = arith.maximumf %34, %35 : vector<12x64xf32>
    %37 = vector.extract_strided_slice %27 {offsets = [12, 0], sizes = [4, 1], strides = [1, 1]} : vector<16x1xf32> to vector<4x1xf32>
    %38 = vector.broadcast %37 : vector<4x1xf32> to vector<4x64xf32>
    %39 = arith.mulf %26, %38 : vector<4x64xf32>
    %40 = vector.extract_strided_slice %28 {offsets = [12, 0], sizes = [4, 1], strides = [1, 1]} : vector<16x1xf32> to vector<4x1xf32>
    %41 = vector.broadcast %40 : vector<4x1xf32> to vector<4x64xf32>
    %42 = arith.addf %39, %41 : vector<4x64xf32>
    %cst_15 = arith.constant 0.000000e+00 : f32
    %43 = vector.broadcast %cst_15 : f32 to vector<4x64xf32>
    %44 = arith.maximumf %42, %43 : vector<4x64xf32>
    %45 = tpu.concatenate %36, %44 in 0 : vector<12x64xf32>, vector<4x64xf32> -> vector<16x64xf32>
    %c0_16 = arith.constant 0 : index
    %c0_17 = arith.constant 0 : index
    %c0_18 = arith.constant 0 : index
    %46 = vector.load %arg6[%c0_16, %c0_17, %c0_18] : memref<1x16x64xf32, #tpu.memory_space<vmem>>, vector<1x16x64xf32>
    %47 = vector.shape_cast %46 : vector<1x16x64xf32> to vector<16x64xf32>
    %48 = vector.shape_cast %45 : vector<16x64xf32> to vector<1x16x64xf32>
    tpu.vector_store %arg6[%c0_16, %c0_17, %c0_18], %48 {strides = array<i32>} : memref<1x16x64xf32, #tpu.memory_space<vmem>>, vector<1x16x64xf32>,
    return
  }
  func.func @transform_0(%arg0: i32) -> (i32, i32, i32) {
    %c0_i32 = arith.constant 0 : i32
    %c0_i32_0 = arith.constant 0 : i32
    %c0_i32_1 = arith.constant 0 : i32
    return %arg0, %c0_i32, %c0_i32_0 : i32, i32, i32
  }
  func.func @transform_1(%arg0: i32) -> (i32, i32, i32) {
    %c0_i32 = arith.constant 0 : i32
    %c0_i32_0 = arith.constant 0 : i32
    %c0_i32_1 = arith.constant 0 : i32
    return %arg0, %c0_i32, %c0_i32_0 : i32, i32, i32
  }
  func.func @transform_2(%arg0: i32) -> (i32, i32) {
    %c0_i32 = arith.constant 0 : i32
    %c0_i32_0 = arith.constant 0 : i32
    %c0_i32_1 = arith.constant 0 : i32
    return %c0_i32, %c0_i32_0 : i32, i32
  }
  func.func @transform_3(%arg0: i32) -> (i32, i32) {
    %c0_i32 = arith.constant 0 : i32
    %c0_i32_0 = arith.constant 0 : i32
    %c0_i32_1 = arith.constant 0 : i32
    return %c0_i32, %c0_i32_0 : i32, i32
  }
  func.func @transform_4(%arg0: i32) -> (i32, i32) {
    %c0_i32 = arith.constant 0 : i32
    %c0_i32_0 = arith.constant 0 : i32
    %c0_i32_1 = arith.constant 0 : i32
    return %c0_i32, %c0_i32_0 : i32, i32
  }
  func.func @transform_5(%arg0: i32) -> (i32, i32, i32) {
    %c0_i32 = arith.constant 0 : i32
    %c0_i32_0 = arith.constant 0 : i32
    %c0_i32_1 = arith.constant 0 : i32
    return %arg0, %c0_i32, %c0_i32_0 : i32, i32, i32
  }
}

</mosaic_0001>

<bundles_post_ra>
// kernel: downsampler_block.3
= control target key start
LH: loop header
LB: loop body
LE: loop exit
PB: predicated region body
PF: predicated region fallthrough
CT: control target
= control target key end

     0   :  { %s711_s18 = smov 0   ;;  %s764_s0 = inlined_call_operand.vmem [shape: bf16[2,16,72], index: 0, kind: input, shape index: {}]   ;;  %s765_s1 = inlined_call_operand.vmem [shape: bf16[2,8,72], index: 1, kind: input, shape index: {}]   ;;  %s766_s2 = inlined_call_operand.vmem [shape: bf16[12,36], index: 2, kind: input, shape index: {}]   ;;  %s767_s3 = inlined_call_operand.vmem [shape: f32[16,1], index: 3, kind: input, shape index: {}]   ;;  %s768_s4 = inlined_call_operand.vmem [shape: f32[16,1], index: 4, kind: input, shape index: {}]   ;;  %s769_s5 = inlined_call_operand.vmem [shape: f32[2,16,64], index: 5, kind: output, shape index: {}]  }
   0x1 LB: > { %s581_s19 = sadd.s32 4294967295, %s672_s18   ;;  %p585_p0 = scmp.ge.s32.totalorder %s672_s18, 1  ;;  %s672_s18 = sphi %s711_s18, %s15_s18  }
   0x2   : > { %p196_p1 = scmp.lt.s32.totalorder %s672_s18, 3 }
   0x4   : > { %p197_p2 = pnand %p585_p0, %p196_p1 }
   0x5   : > { %v722_v0 = vld [vmem:[%s766_s2] sm:$0x3f] (!%p197_p2)   ;;  %p228_p3 = scmp.lt.s32.totalorder (!%p197_p2), %s581_s19, 1  ;;  %s674_s22 = smov (!%p197_p2), 104   ;;  %v675_v1 = vmov (!%p197_p2), 0.0   ;;  %vm676_vm0 = vmmov (!%p197_p2), 0  }
   0x6   : > { %200 = sbr.rel (%p197_p2) target bundleno = 374 (0x176), region = 40  ;;  %358 = vrot.lane.b32.xlu1 (!%p197_p2), %v722_v0, %s674_s22  ;;  %623 = vmatprep.subr.bf16.mxu0 (!%p197_p2), %v675_v1  ;;  %vm264_vm1 = vcmask (!%p197_p2), 1043456   ;;  %s677_s6 = smov (!%p197_p2), 120   ;;  %v478_v9 = vld [vmem:[%s767_s3 + $0x8] sm:$0xff] (!%p197_p2)  ;;  %v679_v10 = vmov (!%p197_p2), 0   ;;  %v477_v15 = vld [vmem:[%s767_s3] sm:$0xff] (!%p197_p2) }
   0x7   : > { %625 = vmatprep.mubr.msk.bf16.mxu0 (!%p197_p2), %vm676_vm0, %v675_v1  ;;  %611 = vmatprep.subr.bf16.mxu1 (!%p197_p2), %v675_v1  ;;  %s678_s9 = smov (!%p197_p2), 112   ;;  %v480_v12 = vld [vmem:[%s768_s4 + $0x8] sm:$0xff] (!%p197_p2)  ;;  %s680_s12 = smov (!%p197_p2), 96   ;;  %v479_v16 = vld [vmem:[%s768_s4] sm:$0xff] (!%p197_p2)  ;;  %vm260_vm2 = vcmask (!%p197_p2), 64512   ;;  %vm420_vm3 = vcmask (!%p197_p2), 1041408  }
   0x8   : > { %613 = vmatprep.mubr.msk.bf16.mxu1 (!%p197_p2), %vm676_vm0, %v675_v1  ;;  %660 = vset.pattern.permute.xlu1 (!%p197_p2), %v679_v10  ;;  %vm416_vm4 = vcmask (!%p197_p2), 31744   ;;  %vm313_vm5 = vcmask (!%p197_p2), 130048   ;;  %vm511_vm6 = vcmask (!%p197_p2), 523264  }
   0x9   : > { %661 = vset.pattern.permute.xlu0 (!%p197_p2), %v679_v10 }
   0xd   : > { %s771_s19 = smov (!%p228_p3, %s581_s19), 1 }
   0xe   : > { %s601_s23 = sshll.u32 %s771_s19, 3  ;;  %s588_s24 = sshll.u32 %s771_s19, 2 }
   0xf   : > { %s232_s27 = scalar_lea.vmem %s764_s0, %s601_s23  ;;  %s236_s30 = scalar_lea.vmem %s765_s1, %s588_s24 }
  0x10   : > { %v243_v2 = vld [vmem:[%s232_s27] sm:$0xf]  ;;  %v244_v3 = vld [vmem:[%s232_s27 + $0x4] sm:$0xf]  ;;  %s602_s17 = sshll.u32 %s771_s19, 4 }
  0x11   : > { %v245_v4 = vld [vmem:[%s236_s30] sm:$0xf]  ;;  %v592_v5 = vcombine.low %v243_v2, %v243_v2  ;;  %v594_v6 = vcombine.low %v243_v2, %v244_v3  ;;  %s241_s22 = scalar_lea.vmem %s769_s5, %s602_s17 }
  0x12   : > { %v597_v7 = vcombine.low %v245_v4, %v245_v4  ;;  %v364_v8 = vsel %vm264_vm1, %v245_v4, 0  ;;  %v468_v11 = vrot.slane %v245_v4, 6  ;;  %v467_v13 = vmax.bf16 %v245_v4, %v244_v3 }
  0x13   : > { %624 = vmatpush3.bf16.msra.mxu0 %v364_v8  ;;  %258 = vrot.lane.b32.xlu0 %v592_v5, %s677_s6 }
  0x14   : > { %414 = vrot.lane.b32.xlu1 %v597_v7, %s677_s6  ;;  %629 = vmatprep.subr.bf16.mxu0 %v675_v1  ;;  %v470_v14 = vmax.bf16 %v468_v11, %v243_v2 }
  0x17   : > { %253 = vrot.lane.b32.xlu0 %v722_v0, %s678_s9 }
  0x18   : > { %488 = vperm.xlu1 %660, %v478_v9  }
  0x1b   : > { %409 = vrot.lane.b32.xlu0 %v722_v0, %s680_s12 }
  0x1c   : > { %500 = vperm.xlu1 %660, %v480_v12  }
  0x1f   : > { %483 = vperm.xlu0 %661, %v477_v15  }
  0x20   : > { %472 = vrot.lane.b32.xlu1 %v470_v14, %s677_s6 }
  0x23   : > { %495 = vperm.xlu0 %661, %v479_v16  }
  0x78   : > { %v359_v17 = vpop.permute.xlu1 %358 }
  0x79   : > { %626 = vmatmul.mubr.msk.bf16.vlgmr.msra.gmra.mrb[0].mxu0 %vm260_vm2, %v359_v17 }
  0x7a   : > { %631 = vmatprep.mubr.msk.bf16.mxu0 %vm676_vm0, %v675_v1 }
  0x85   : > { %v259_v18 = vpop.permute.xlu0 %258 }
  0x86   : > { %v415_v19 = vpop.permute.xlu1 %414  ;;  %v266_v20 = vsel %vm264_vm1, %v259_v18, 0 }
  0x87   : > { %v422_v21 = vsel %vm420_vm3, %v415_v19, 0  ;;  %612 = vmatpush3.bf16.msra.mxu1 %v266_v20 }
  0x88   : > { %630 = vmatpush3.bf16.msra.mxu0 %v422_v21  ;;  %617 = vmatprep.subr.bf16.mxu1 %v675_v1 }
  0x89   : > { %v254_v22 = vpop.permute.xlu0 %253 }
  0x8a   : > { %614 = vmatmul.mubr.msk.bf16.vlgmr.msra.gmra.mrb[0].mxu1 %vm260_vm2, %v254_v22 }
  0x8b   : > { %618 = vmatpush3.bf16.msra.mxu1 %v594_v6  ;;  %619 = vmatprep.mubr.msk.bf16.mxu1 %vm676_vm0, %v675_v1 }
  0x8d   : > { %v410_v23 = vpop.permute.xlu0 %409 }
  0x8e   : > { %632 = vmatmul.mubr.msk.bf16.vlgmr.msra.gmra.mrb[0].mxu0 %vm416_vm4, %v410_v23 }
  0x96   : > { %620 = vmatmul.mubr.msk.bf16.vlgmr.msra.gmra.mrb[0].mxu1 %vm313_vm5, %v722_v0 }
  0x97   : > { %v489_v24 = vpop.permute.xlu1 %488 }
  0x9b   : > { %v501_v25 = vpop.permute.xlu1 %500 }
  0x9e   : > { %v484_v32 = vpop.permute.xlu0 %483 }
  0x9f   : > { %v473_v26 = vpop.permute.xlu1 %472 }
  0xa0   : > { %v475_v28 = vmax.bf16 %v473_v26, %v467_v13 }
  0xa2   : > { %v476_v33 = vunpack.c.l.bf16 %v475_v28  ;;  %v496_v39 = vpop.permute.xlu0 %495 }
  0xa4   : > { %v507_v35 = vmul.f32 %v489_v24, %v476_v33 }
  0xa6   : > { %v508_v43 = vadd.f32 %v507_v35, %v501_v25 }
  0xa8   : > { %v509_v48 = vmax.f32 %v508_v43, 0.0 }
 0x161   : > { %v458_v27 = vpop.f32.mrb[0].mxu0 }
 0x162   : > { %v633_v29 = vpop.f32.mrb[1].mxu0 }
 0x163   : > { %v461_v30 = vpop.f32.mrb[2].mxu0 }
 0x164   : > { %v634_v31 = vpop.f32.mrb[3].mxu0 }
 0x169   : > { %v351_v34 = vpop.f32.mrb[0].mxu1 }
 0x16a   : > { %v635_v36 = vadd.f32 %v458_v27, %v351_v34  ;;  %v621_v37 = vpop.f32.mrb[1].mxu1 }
 0x16b   : > { %v354_v38 = vpop.f32.mrb[2].mxu1 }
 0x16c   : > { %v491_v40 = vmul.f32 %v635_v36, %v484_v32  ;;  %v636_v41 = vadd.f32 %v461_v30, %v354_v38  ;;  %v622_v42 = vpop.f32.mrb[3].mxu1 }
 0x16e   : > { %v492_v44 = vmul.f32 %v636_v41, %v489_v24  ;;  %v503_v45 = vadd.f32 %v496_v39, %v491_v40 }
 0x170   : > { %v504_v46 = vadd.f32 %v501_v25, %v492_v44  ;;  %v505_v47 = vmax.f32 %v503_v45, 0.0 }
 0x172   : > { %v506_v49 = vmax.f32 %v504_v46, 0.0  ;;  %512 = vst.msk [vmem:[%s241_s22] sm:$0xff] %vm511_vm6, %v505_v47 }
 0x174   : > { %v510_v50 = vsel %vm264_vm1, %v506_v49, %v509_v48 }
 0x175   : > { %513 = vst.msk [vmem:[%s241_s22 + $0x8] sm:$0xff] %vm511_vm6, %v510_v50 }
 0x176 PF: > { %s15_s18 = sadd.s32 1, %s672_s18  }
 0x177   : > { %p12_p4 = scmp.ge.s32.totalorder %s15_s18, 4  }
 0x179   :  { %14 = sbr.rel (!%p12_p4) target bundleno = 1 (0x1), region = 73 }

// kernel: downsampler_block.2
= control target key start
LH: loop header
LB: loop body
LE: loop exit
PB: predicated region body
PF: predicated region fallthrough
CT: control target
= control target key end

     0   :  { %s660_s12 = smov 0   ;;  %s696_s0 = inlined_call_operand.vmem [shape: bf16[2,16,72], index: 0, kind: input, shape index: {}]   ;;  %s697_s1 = inlined_call_operand.vmem [shape: bf16[2,8,72], index: 1, kind: input, shape index: {}]   ;;  %s698_s2 = inlined_call_operand.vmem [shape: bf16[12,36], index: 2, kind: input, shape index: {}]   ;;  %s699_s3 = inlined_call_operand.vmem [shape: f32[2,32,128], index: 3, kind: output, shape index: {}]  }
   0x1 LB: > { %s540_s13 = sadd.s32 4294967295, %s631_s12   ;;  %p544_p0 = scmp.ge.s32.totalorder %s631_s12, 1  ;;  %s631_s12 = sphi %s660_s12, %s13_s12  }
   0x2   : > { %p146_p1 = scmp.lt.s32.totalorder %s631_s12, 3 }
   0x4   : > { %p147_p2 = pnand %p544_p0, %p146_p1 }
   0x5   : > { %v621_v0 = vld [vmem:[%s698_s2] sm:$0x3f] (!%p147_p2)   ;;  %p174_p3 = scmp.lt.s32.totalorder (!%p147_p2), %s540_s13, 1  ;;  %s633_s16 = smov (!%p147_p2), 104   ;;  %v634_v1 = vmov (!%p147_p2), 0.0   ;;  %vm635_vm0 = vmmov (!%p147_p2), 0  }
   0x6   : > { %150 = sbr.rel (%p147_p2) target bundleno = 650 (0x28a), region = 32  ;;  %304 = vrot.lane.b32.xlu1 (!%p147_p2), %v621_v0, %s633_s16  ;;  %582 = vmatprep.subr.bf16.mxu0 (!%p147_p2), %v634_v1  ;;  %vm210_vm1 = vcmask (!%p147_p2), 1043456   ;;  %s636_s25 = smov (!%p147_p2), 120   ;;  %vm206_vm2 = vcmask (!%p147_p2), 64512   ;;  %vm366_vm3 = vcmask (!%p147_p2), 1041408   ;;  %vm362_vm4 = vcmask (!%p147_p2), 31744  }
   0x7   : > { %584 = vmatprep.mubr.msk.bf16.mxu0 (!%p147_p2), %vm635_vm0, %v634_v1  ;;  %570 = vmatprep.subr.bf16.mxu1 (!%p147_p2), %v634_v1  ;;  %s637_s26 = smov (!%p147_p2), 112   ;;  %s638_s27 = smov (!%p147_p2), 96   ;;  %vm259_vm5 = vcmask (!%p147_p2), 130048   ;;  %vm431_vm6 = vcmask (!%p147_p2), 523268   ;;  %v639_v25 = vmov (!%p147_p2), 0   ;;  %vm423_vm7 = vcmask (!%p147_p2), 523264  }
   0x8   : > { %572 = vmatprep.mubr.msk.bf16.mxu1 (!%p147_p2), %vm635_vm0, %v634_v1  ;;  %619 = vset.pattern.permute.xlu1 (!%p147_p2), %v639_v25  ;;  %vm427_vm8 = vcmask (!%p147_p2), 519168  }
   0x9   : > { %620 = vset.pattern.permute.xlu0 (!%p147_p2), %v639_v25 }
   0xd   : > { %s701_s13 = smov (!%p174_p3, %s540_s13), 1 }
   0xe   : > { %s560_s17 = sshll.u32 %s701_s13, 3  ;;  %s547_s18 = sshll.u32 %s701_s13, 2 }
   0xf   : > { %s178_s21 = scalar_lea.vmem %s696_s0, %s560_s17  ;;  %s182_s24 = scalar_lea.vmem %s697_s1, %s547_s18 }
  0x10   : > { %v189_v2 = vld [vmem:[%s178_s21] sm:$0xf]  ;;  %v190_v10 = vld [vmem:[%s178_s21 + $0x4] sm:$0xf]  ;;  %s561_s28 = sshll.u32 %s701_s13, 5 }
  0x11   : > { %v191_v3 = vld [vmem:[%s182_s24] sm:$0xf]  ;;  %v551_v4 = vcombine.low %v189_v2, %v189_v2  ;;  %v553_v15 = vcombine.low %v189_v2, %v190_v10  ;;  %s187_s4 = scalar_lea.vmem %s699_s3, %s561_s28 }
  0x12   : > { %v556_v5 = vcombine.low %v191_v3, %v191_v3  ;;  %v310_v6 = vsel %vm210_vm1, %v191_v3, 0  ;;  %v414_v7 = vrot.slane %v191_v3, 6  ;;  %v413_v18 = vmax.bf16 %v191_v3, %v190_v10 }
  0x13   : > { %583 = vmatpush3.bf16.msra.mxu0 %v310_v6  ;;  %204 = vrot.lane.b32.xlu0 %v551_v4, %s636_s25 }
  0x14   : > { %360 = vrot.lane.b32.xlu1 %v556_v5, %s636_s25  ;;  %588 = vmatprep.subr.bf16.mxu0 %v634_v1  ;;  %v416_v8 = vmax.bf16 %v414_v7, %v189_v2 }
  0x17   : > { %199 = vrot.lane.b32.xlu0 %v621_v0, %s637_s26 }
  0x18   : > { %418 = vrot.lane.b32.xlu1 %v416_v8, %s636_s25 }
  0x1b   : > { %355 = vrot.lane.b32.xlu0 %v621_v0, %s638_s27 }
  0x78   : > { %v305_v9 = vpop.permute.xlu1 %304 }
  0x79   : > { %585 = vmatmul.mubr.msk.bf16.vlgmr.msra.gmra.mrb[0].mxu0 %vm206_vm2, %v305_v9 }
  0x7a   : > { %590 = vmatprep.mubr.msk.bf16.mxu0 %vm635_vm0, %v634_v1 }
  0x85   : > { %v205_v11 = vpop.permute.xlu0 %204 }
  0x86   : > { %v361_v12 = vpop.permute.xlu1 %360  ;;  %v212_v13 = vsel %vm210_vm1, %v205_v11, 0 }
  0x87   : > { %v368_v14 = vsel %vm366_vm3, %v361_v12, 0  ;;  %571 = vmatpush3.bf16.msra.mxu1 %v212_v13 }
  0x88   : > { %589 = vmatpush3.bf16.msra.mxu0 %v368_v14  ;;  %576 = vmatprep.subr.bf16.mxu1 %v634_v1 }
  0x89   : > { %v200_v16 = vpop.permute.xlu0 %199 }
  0x8a   : > { %573 = vmatmul.mubr.msk.bf16.vlgmr.msra.gmra.mrb[0].mxu1 %vm206_vm2, %v200_v16  ;;  %v419_v19 = vpop.permute.xlu1 %418 }
  0x8b   : > { %577 = vmatpush3.bf16.msra.mxu1 %v553_v15  ;;  %578 = vmatprep.mubr.msk.bf16.mxu1 %vm635_vm0, %v634_v1  ;;  %v421_v20 = vmax.bf16 %v419_v19, %v413_v18 }
  0x8d   : > { %v356_v17 = vpop.permute.xlu0 %355  ;;  %v422_v21 = vunpack.c.l.bf16 %v421_v20 }
  0x8e   : > { %591 = vmatmul.mubr.msk.bf16.vlgmr.msra.gmra.mrb[0].mxu0 %vm362_vm4, %v356_v17 }
  0x8f   : > { %v432_v22 = vsel %vm431_vm6, %v422_v21, 0.0  ;;  %v443_v23 = vmul.f32 %v422_v21, %v422_v21 }
  0x90   : > { %433 = vadd.xlane.f32.xlu1 %v432_v22 }
  0x91   : > { %v444_v24 = vsel %vm431_vm6, %v443_v23, 0.0 }
  0x92   : > { %445 = vadd.xlane.f32.xlu0 %v444_v24 }
  0x96   : > { %579 = vmatmul.mubr.msk.bf16.vlgmr.msra.gmra.mrb[0].mxu1 %vm259_vm5, %v621_v0 }
 0x11d   : > { %v434_v42 = vpop.xlane.xlu1 %433 }
 0x11f   : > { %v446_v43 = vpop.xlane.xlu0 %445 }
 0x161   : > { %v404_v26 = vpop.f32.mrb[0].mxu0 }
 0x162   : > { %v592_v27 = vpop.f32.mrb[1].mxu0 }
 0x163   : > { %v407_v28 = vpop.f32.mrb[2].mxu0 }
 0x164   : > { %v593_v29 = vpop.f32.mrb[3].mxu0 }
 0x169   : > { %v297_v30 = vpop.f32.mrb[0].mxu1 }
 0x16a   : > { %v594_v31 = vadd.f32 %v404_v26, %v297_v30  ;;  %v580_v32 = vpop.f32.mrb[1].mxu1 }
 0x16b   : > { %v300_v33 = vpop.f32.mrb[2].mxu1 }
 0x16c   : > { %v595_v34 = vadd.f32 %v407_v28, %v300_v33  ;;  %v581_v35 = vpop.f32.mrb[3].mxu1  ;;  %v424_v36 = vsel %vm423_vm7, %v594_v31, 0.0  ;;  %v435_v40 = vmul.f32 %v594_v31, %v594_v31 }
 0x16d   : > { %425 = vadd.xlane.f32.xlu1 %v424_v36 }
 0x16e   : > { %v428_v37 = vsel %vm427_vm8, %v595_v34, 0.0  ;;  %v436_v38 = vmul.f32 %v595_v34, %v595_v34  ;;  %v437_v41 = vsel %vm423_vm7, %v435_v40, 0.0 }
 0x16f   : > { %429 = vadd.xlane.f32.xlu0 %v428_v37 }
 0x170   : > { %v440_v39 = vsel %vm427_vm8, %v436_v38, 0.0 }
 0x173   : > { %441 = vadd.xlane.f32.xlu0 %v440_v39 }
 0x177   : > { %438 = vadd.xlane.f32.xlu0 %v437_v41 }
 0x1fa   : > { %v426_v44 = vpop.xlane.xlu1 %425 }
 0x1fb   : > { %451 = vperm.xlu1 %619, %v426_v44  }
 0x1fc   : > { %v430_v45 = vpop.xlane.xlu0 %429 }
 0x1fd   : > { %v447_v46 = vsel %vm210_vm1, %v430_v45, %v434_v42 }
 0x1fe   : > { %456 = vperm.xlu0 %620, %v447_v46  }
 0x200   : > { %v442_v47 = vpop.xlane.xlu0 %441 }
 0x201   : > { %v448_v49 = vsel %vm210_vm1, %v442_v47, %v446_v43 }
 0x204   : > { %v439_v48 = vpop.xlane.xlu0 %438 }
 0x205   : > { %461 = vperm.xlu1 %619, %v439_v48  }
 0x209   : > { %466 = vperm.xlu1 %619, %v448_v49  }
 0x27a   : > { %v452_v50 = vpop.permute.xlu1 %451 }
 0x27b   : > { %469 = vst [vmem:[%s187_s4] sm:$0xff] %v452_v50 }
 0x27d   : > { %v457_v51 = vpop.permute.xlu0 %456 }
 0x27e   : > { %470 = vst [vmem:[%s187_s4 + $0x8] sm:$0xff] %v457_v51 }
 0x284   : > { %v462_v52 = vpop.permute.xlu1 %461 }
 0x285   : > { %471 = vst [vmem:[%s187_s4 + $0x10] sm:$0xff] %v462_v52 }
 0x288   : > { %v467_v53 = vpop.permute.xlu1 %466 }
 0x289   : > { %472 = vst [vmem:[%s187_s4 + $0x18] sm:$0xff] %v467_v53 }
 0x28a PF: > { %s13_s12 = sadd.s32 1, %s631_s12  }
 0x28b   : > { %p10_p4 = scmp.ge.s32.totalorder %s13_s12, 4  }
 0x28d   :  { %12 = sbr.rel (!%p10_p4) target bundleno = 1 (0x1), region = 65 }

</bundles_post_ra>
